<compile_context>
chip_gen: v6e
topology: v6e:2x2x1
jax: 0.10.0
libtpu: 0.0.40
codegen_flags: <defaults>
</compile_context>

<pallas_src>
import jax
import jax.numpy as jnp
from jax.experimental import pallas as pl
from jax.experimental.pallas import tpu as pltpu


def dblock_kernel(x_ref, w12_ref, b12_ref, wout_ref, bout_ref, out_ref):
    # Shapes (per grid step):
    #   x_ref   : [bm, in]
    #   w12_ref : [in, 2*hidden]   (fc1 | fc2 concatenated on the lane axis)
    #   b12_ref : [1, 2*hidden]
    #   wout_ref: [hidden, 2*out]  (fc_mu | fc_logsigma concatenated)
    #   bout_ref: [1, 2*out]
    #   out_ref : [bm, 2*out]      (mu | logsigma concatenated)
    hidden = w12_ref.shape[1] // 2

    x = x_ref[...]
    # One wide hidden projection instead of two narrow ones.
    h = jnp.dot(x, w12_ref[...], preferred_element_type=jnp.float32) + b12_ref[...]
    h1 = h[:, :hidden]
    h2 = h[:, hidden:]

    # Gated activation in f32 (EUP tanh + VALU mul; sigmoid via jax.nn).
    t = jnp.tanh(h1) * jax.nn.sigmoid(h2)

    # One wide head matmul; single lane-dense store.
    out = (jnp.dot(t.astype(wout_ref.dtype), wout_ref[...],
                   preferred_element_type=jnp.float32)
           + bout_ref[...])
    out_ref[...] = out.astype(out_ref.dtype)


def _round_up(x, m):
    return ((x + m - 1) // m) * m


def _pick_block_m(B, in_size, hidden, out_size, x_dtype, w_dtype,
                  vmem_budget_bytes=12 * 1024 * 1024):
    """Largest multiple-of-8 batch tile that keeps tiles + weights in VMEM.

    Budget is conservative (12 MiB) so the same choice is safe under the
    default scoped-VMEM limits of v5e (16 MiB) and v6e/v7x (32 MiB).
    """
    isx = jnp.dtype(x_dtype).itemsize
    isw = jnp.dtype(w_dtype).itemsize
    # Weights/biases are (by default) double-buffered even though constant.
    weight_bytes = 2 * isw * (in_size * 2 * hidden + 2 * hidden
                              + hidden * 2 * out_size + 2 * out_size)
    per_row = (2 * isx * in_size            # x tile, double buffered
               + 2 * isx * 2 * out_size     # out tile, double buffered
               + 4 * 4 * hidden)            # f32 intermediates (h, t, slices)
    avail = max(vmem_budget_bytes - weight_bytes, per_row * 8)
    bm = max(8, min(1024, (avail // per_row) // 8 * 8))
    # Never exceed the (padded) batch.
    bm = min(bm, _round_up(B, 8))
    # Prefer >=2 grid steps when the batch allows: engages both v7x cores and
    # gives the software pipeline something to overlap.
    if B >= 16 and bm >= B:
        bm = _round_up(pl.cdiv(B, 2), 8)
    return bm


def dblock_forward(x, params, *, block_m=None):
    """mu, logsigma = DBlock(x).  params = (w1,b1,w2,b2,wmu,bmu,wls,bls)."""
    w1, b1, w2, b2, wmu, bmu, wls, bls = params
    B, in_size = x.shape
    hidden = w1.shape[1]
    out_size = wmu.shape[1]

    # Fuse the weight pairs once outside the kernel (cheap vs. the matmuls).
    w12 = jnp.concatenate([w1, w2], axis=1)     # [in, 2*hidden]
    b12 = jnp.concatenate([b1, b2], axis=1)     # [1, 2*hidden]
    wout = jnp.concatenate([wmu, wls], axis=1)  # [hidden, 2*out]
    bout = jnp.concatenate([bmu, bls], axis=1)  # [1, 2*out]

    if block_m is None:
        block_m = _pick_block_m(B, in_size, hidden, out_size, x.dtype, w12.dtype)

    grid = (pl.cdiv(B, block_m),)
    # Note: if B % block_m != 0 the padded rows of the last x tile hold
    # unspecified data; rows are independent so valid outputs are unaffected.

    isx = jnp.dtype(x.dtype).itemsize
    isw = jnp.dtype(w12.dtype).itemsize
    cost = pl.CostEstimate(
        flops=2 * B * (in_size * 2 * hidden + hidden * 2 * out_size),
        transcendentals=2 * B * hidden,          # tanh + sigmoid per hidden elem
        bytes_accessed=(B * in_size * isx
                        + (in_size * 2 * hidden + 2 * hidden) * isw
                        + (hidden * 2 * out_size + 2 * out_size) * isw
                        + B * 2 * out_size * isx),
    )

    out = pl.pallas_call(
        dblock_kernel,
        out_shape=jax.ShapeDtypeStruct((B, 2 * out_size), x.dtype),
        grid=grid,
        in_specs=[
            pl.BlockSpec((block_m, in_size), lambda i: (i, 0)),
            pl.BlockSpec((in_size, 2 * hidden), lambda i: (0, 0)),
            pl.BlockSpec((1, 2 * hidden), lambda i: (0, 0)),
            pl.BlockSpec((hidden, 2 * out_size), lambda i: (0, 0)),
            pl.BlockSpec((1, 2 * out_size), lambda i: (0, 0)),
        ],
        out_specs=pl.BlockSpec((block_m, 2 * out_size), lambda i: (i, 0)),
        compiler_params=pltpu.CompilerParams(
            dimension_semantics=("parallel",)),
        cost_estimate=cost,
    )(x, w12, b12, wout, bout)

    # Static split of the fused lane-dense output.
    return out[:, :out_size], out[:, out_size:]


def init_dblock_params(key, input_size, hidden_size, output_size, dtype=jnp.float32):
    """Deterministic synthetic init (PyTorch-Linear-like uniform ranges)."""
    ks = jax.random.split(key, 8)

    def lin(kw, kb, fan_in, fan_out):
        bound = 1.0 / jnp.sqrt(fan_in)
        w = jax.random.uniform(kw, (fan_in, fan_out), dtype, -bound, bound)
        b = jax.random.uniform(kb, (1, fan_out), dtype, -bound, bound)
        return w, b

    w1, b1 = lin(ks[0], ks[1], input_size, hidden_size)
    w2, b2 = lin(ks[2], ks[3], input_size, hidden_size)
    wmu, bmu = lin(ks[4], ks[5], hidden_size, output_size)
    wls, bls = lin(ks[6], ks[7], hidden_size, output_size)
    return (w1, b1, w2, b2, wmu, bmu, wls, bls)


def dblock_ref(x, params):
    """Pure-JAX reference reproducing the PyTorch forward exactly."""
    w1, b1, w2, b2, wmu, bmu, wls, bls = params
    t = jnp.tanh(x @ w1 + b1) * jax.nn.sigmoid(x @ w2 + b2)
    return t @ wmu + bmu, t @ wls + bls


if __name__ == "__main__":
    key = jax.random.PRNGKey(0)
    k_x, k_p, k_x2 = jax.random.split(key, 3)

    input_size = 16
    hidden_size = 32
    output_size = 8
    params = init_dblock_params(k_p, input_size, hidden_size, output_size)

    # Small single-tile case.
    batch = 8
    x = jax.random.normal(k_x, (batch, input_size), jnp.float32)
    mu, logsigma = dblock_forward(x, params)
    jax.block_until_ready((mu, logsigma))
    mu_ref, ls_ref = dblock_ref(x, params)
    assert mu.shape == (batch, output_size) and logsigma.shape == (batch, output_size)
    assert jnp.allclose(mu, mu_ref, atol=1e-5, rtol=1e-5)
    assert jnp.allclose(logsigma, ls_ref, atol=1e-5, rtol=1e-5)

    # Larger batch: exercises multi-step grid (pipelined, megacore-shardable).
    batch2 = 128
    x2 = jax.random.normal(k_x2, (batch2, input_size), jnp.float32)
    mu2, ls2 = dblock_forward(x2, params)
    jax.block_until_ready((mu2, ls2))
    mu2_ref, ls2_ref = dblock_ref(x2, params)
    assert jnp.allclose(mu2, mu2_ref, atol=1e-5, rtol=1e-5)
    assert jnp.allclose(ls2, ls2_ref, atol=1e-5, rtol=1e-5)

    print("KERNEL_OK")
</pallas_src>

<mosaic_0001>
module attributes {stable_mosaic.version = 11 : i64} {
  func.func @dblock_kernel(%arg0: i32, %arg1: memref<8x16xf32, #tpu.memory_space<vmem>>, %arg2: memref<16x64xf32, #tpu.memory_space<vmem>>, %arg3: memref<1x64xf32, #tpu.memory_space<vmem>>, %arg4: memref<32x16xf32, #tpu.memory_space<vmem>>, %arg5: memref<1x16xf32, #tpu.memory_space<vmem>>, %arg6: memref<8x16xf32, #tpu.memory_space<vmem>>) attributes {dimension_semantics = [#tpu.dimension_semantics<parallel>], iteration_bounds = array<i64: 1>, scalar_prefetch = 0 : i64, scratch_operands = 0 : i64, tpu.core_type = #tpu.core_type<tc>, window_params = [{transform_indices = @transform_0, window_bounds = array<i64: 8, 16>}, {pipeline_mode = #tpu.pipeline_mode<synchronous>, transform_indices = @transform_1, window_bounds = array<i64: 16, 64>}, {pipeline_mode = #tpu.pipeline_mode<synchronous>, transform_indices = @transform_2, window_bounds = array<i64: 1, 64>}, {pipeline_mode = #tpu.pipeline_mode<synchronous>, transform_indices = @transform_3, window_bounds = array<i64: 32, 16>}, {pipeline_mode = #tpu.pipeline_mode<synchronous>, transform_indices = @transform_4, window_bounds = array<i64: 1, 16>}, {transform_indices = @transform_5, window_bounds = array<i64: 8, 16>}]} {
    %c0 = arith.constant 0 : index
    %c0_0 = arith.constant 0 : index
    %0 = vector.load %arg1[%c0, %c0_0] : memref<8x16xf32, #tpu.memory_space<vmem>>, vector<8x16xf32>
    %c0_1 = arith.constant 0 : index
    %c0_2 = arith.constant 0 : index
    %1 = vector.load %arg2[%c0_1, %c0_2] : memref<16x64xf32, #tpu.memory_space<vmem>>, vector<16x64xf32>
    %cst = arith.constant dense<0.000000e+00> : vector<8x64xf32>
    %2 = tpu.matmul %0, %1, %cst {dimension_numbers = #tpu.dot_dimension_numbers<[1], [0], [0], [1], [0, 0, 1, 1], [], []>} : vector<8x16xf32>, vector<16x64xf32>, vector<8x64xf32> -> vector<8x64xf32>
    %c0_3 = arith.constant 0 : index
    %c0_4 = arith.constant 0 : index
    %3 = vector.load %arg3[%c0_3, %c0_4] : memref<1x64xf32, #tpu.memory_space<vmem>>, vector<1x64xf32>
    %4 = vector.broadcast %3 : vector<1x64xf32> to vector<8x64xf32>
    %5 = arith.addf %2, %4 : vector<8x64xf32>
    %6 = vector.extract_strided_slice %5 {offsets = [0, 0], sizes = [8, 32], strides = [1, 1]} : vector<8x64xf32> to vector<8x32xf32>
    %7 = vector.extract_strided_slice %5 {offsets = [0, 32], sizes = [8, 32], strides = [1, 1]} : vector<8x64xf32> to vector<8x32xf32>
    %8 = math.tanh %6 : vector<8x32xf32>
    %9 = arith.negf %7 : vector<8x32xf32>
    %10 = math.exp %9 : vector<8x32xf32>
    %cst_5 = arith.constant 1.000000e+00 : f32
    %11 = vector.broadcast %cst_5 : f32 to vector<8x32xf32>
    %12 = arith.addf %11, %10 : vector<8x32xf32>
    %13 = arith.divf %11, %12 : vector<8x32xf32>
    %14 = arith.mulf %8, %13 : vector<8x32xf32>
    %c0_6 = arith.constant 0 : index
    %c0_7 = arith.constant 0 : index
    %15 = vector.load %arg4[%c0_6, %c0_7] : memref<32x16xf32, #tpu.memory_space<vmem>>, vector<32x16xf32>
    %cst_8 = arith.constant dense<0.000000e+00> : vector<8x16xf32>
    %16 = tpu.matmul %14, %15, %cst_8 {dimension_numbers = #tpu.dot_dimension_numbers<[1], [0], [0], [1], [0, 0, 1, 1], [], []>} : vector<8x32xf32>, vector<32x16xf32>, vector<8x16xf32> -> vector<8x16xf32>
    %c0_9 = arith.constant 0 : index
    %c0_10 = arith.constant 0 : index
    %17 = vector.load %arg5[%c0_9, %c0_10] : memref<1x16xf32, #tpu.memory_space<vmem>>, vector<1x16xf32>
    %18 = vector.broadcast %17 : vector<1x16xf32> to vector<8x16xf32>
    %19 = arith.addf %16, %18 : vector<8x16xf32>
    %c0_11 = arith.constant 0 : index
    %c0_12 = arith.constant 0 : index
    %20 = vector.load %arg6[%c0_11, %c0_12] : memref<8x16xf32, #tpu.memory_space<vmem>>, vector<8x16xf32>
    tpu.vector_store %arg6[%c0_11, %c0_12], %19 {strides = array<i32>} : memref<8x16xf32, #tpu.memory_space<vmem>>, vector<8x16xf32>,
    return
  }
  func.func @transform_0(%arg0: i32) -> (i32, i32) {
    %c0_i32 = arith.constant 0 : i32
    %c0_i32_0 = arith.constant 0 : i32
    return %arg0, %c0_i32 : i32, i32
  }
  func.func @transform_1(%arg0: i32) -> (i32, i32) {
    %c0_i32 = arith.constant 0 : i32
    %c0_i32_0 = arith.constant 0 : i32
    %c0_i32_1 = arith.constant 0 : i32
    return %c0_i32, %c0_i32_0 : i32, i32
  }
  func.func @transform_2(%arg0: i32) -> (i32, i32) {
    %c0_i32 = arith.constant 0 : i32
    %c0_i32_0 = arith.constant 0 : i32
    %c0_i32_1 = arith.constant 0 : i32
    return %c0_i32, %c0_i32_0 : i32, i32
  }
  func.func @transform_3(%arg0: i32) -> (i32, i32) {
    %c0_i32 = arith.constant 0 : i32
    %c0_i32_0 = arith.constant 0 : i32
    %c0_i32_1 = arith.constant 0 : i32
    return %c0_i32, %c0_i32_0 : i32, i32
  }
  func.func @transform_4(%arg0: i32) -> (i32, i32) {
    %c0_i32 = arith.constant 0 : i32
    %c0_i32_0 = arith.constant 0 : i32
    %c0_i32_1 = arith.constant 0 : i32
    return %c0_i32, %c0_i32_0 : i32, i32
  }
  func.func @transform_5(%arg0: i32) -> (i32, i32) {
    %c0_i32 = arith.constant 0 : i32
    %c0_i32_0 = arith.constant 0 : i32
    return %arg0, %c0_i32 : i32, i32
  }
}

</mosaic_0001>

<bundles_post_ra>
// kernel: tpu_custom_call.1
= control target key start
LH: loop header
LB: loop body
LE: loop exit
PB: predicated region body
PF: predicated region fallthrough
CT: control target
= control target key end

     0   :  { %v280_v1 = vmov 0.0   ;;  %vm281_vm0 = vmmov 0   ;;  %s346_s0 = inlined_call_operand.vmem [shape: f32[8,16], index: 0, kind: input, shape index: {}]   ;;  %s347_s1 = inlined_call_operand.vmem [shape: f32[16,64], index: 1, kind: input, shape index: {}]   ;;  %s348_s2 = inlined_call_operand.vmem [shape: f32[1,64], index: 2, kind: input, shape index: {}]   ;;  %s349_s3 = inlined_call_operand.vmem [shape: f32[32,16], index: 3, kind: input, shape index: {}]   ;;  %s350_s4 = inlined_call_operand.vmem [shape: f32[1,16], index: 4, kind: input, shape index: {}]   ;;  %s351_s5 = inlined_call_operand.hbm [shape: f32[8,16], index: 5, kind: output, shape index: {}]  }
   0x1   :  { %v23_v0 = vld [vmem:[%s347_s1 + $0x8] sm:$0xff]  ;;  %230 = vmatprep.subr.mxu0 %v280_v1  ;;  %v22_v2 = vld [vmem:[%s347_s1] sm:$0xff]  ;;  %234 = vmatprep.mubr.msk.f32.mxu0 %vm281_vm0, %v280_v1 }
   0x2   :  { %10 = vsyncpa [#allocation3], 0  ;;  %231 = vmatpush3.msra.mxu0 %v23_v0  ;;  %v21_v3 = vld [vmem:[%s346_s0] sm:$0xff]  ;;  %vm31_vm1 = vcmask 130048   ;;  %237 = vmatprep.subr.mxu1 %v280_v1  ;;  %v120_v4 = vld [vmem:[%s349_s3 + $0x18] sm:$0xff]  ;;  %vm128_vm2 = vcmask 261120  }
   0x3   :  { %232 = vmatprep.subr.mxu0 %v280_v1  ;;  %245 = vmatprep.mubr.msk.f32.mxu1 %vm281_vm0, %v280_v1  ;;  %v119_v5 = vld [vmem:[%s349_s3 + $0x10] sm:$0xff]  ;;  %v217_v6 = vld [vmem:[%s348_s2] ss:$0 sm:$0xff]  ;;  %v118_v13 = vld [vmem:[%s349_s3 + $0x8] sm:$0xff]  ;;  %s282_s2 = smov 96   ;;  %s283_s9 = smov [#allocation2]  }
   0x4   :  { %233 = vmatpush3.msra.mxu0 %v22_v2  ;;  %238 = vmatpush3.msra.mxu1 %v120_v4  ;;  %v117_v14 = vld [vmem:[%s349_s3] sm:$0xff]  ;;  %s209_s10 = sshll.u32 %s283_s9, 4  ;;  %s210_s10 = int_to_ptr.vmem [resolvable:$true] %s209_s10 }
   0x5   :  { %235 = vmatmul.mubr.msk.f32.vlgmr.msra.gmra.mxu0 %vm31_vm1, %v21_v3  ;;  %239 = vmatprep.subr.mxu1 %v280_v1  ;;  %v220_v19 = vld [vmem:[%s350_s4] ss:$0 sm:$0xff]  ;;  %s258_s3 = scalar_lea.vmem %s210_s10, 128  ;;  %p263_p1 = scmp.lt.s32.totalorder %s210_s10, %s210_s10 }
   0x6   :  { %240 = vmatpush3.msra.mxu1 %v119_v5  ;;  %p259_p0 = scmp.ne.s32.totalorder %s210_s10, %s258_s3  ;;  %p264_p2 = scmp.lt.s32.totalorder %s258_s3, %s258_s3 }
   0x7   :  { %241 = vmatprep.subr.mxu1 %v280_v1 }
   0x8   :  { %242 = vmatpush3.msra.mxu1 %v118_v13  ;;  %p265_p3 = por %p264_p2, %p263_p1 }
   0x9   :  { %243 = vmatprep.subr.mxu1 %v280_v1 }
   0xa   :  { %244 = vmatpush3.msra.mxu1 %v117_v14  ;;  %p266_p4 = pnand %p265_p3, %p259_p0 }
  0xc5   :  { %v101_v7 = vpop.f32.mrf.mxu0 }
  0xc6   :  { %v102_v8 = vadd.f32 %v217_v6, %v101_v7 }
  0xc7   :  { %v236_v9 = vpop.f32.mrf.mxu0 }
  0xc8   :  { %v219_v10 = vmul.f32 -1.442695, %v102_v8 }
  0xca   :  { %252 = vpow2.f32 %v219_v10 }
  0xd7   :  { %v253_v11 = vpop.eup %252 }
  0xd8   :  { %v109_v12 = vadd.f32 1.0, %v253_v11 }
  0xda   :  { %254 = vrcp.f32 %v109_v12 }
  0xdb   :  { %256 = vtanh.f32 %v102_v8 }
  0xe7   :  { %v255_v15 = vpop.eup %254 }
  0xe8   :  { %113 = vrot.lane.b32.xlu0 %v255_v15, %s282_s2  ;;  %v257_v16 = vpop.eup %256 }
 0x15a   :  { %v114_v17 = vpop.permute.xlu0 %113 }
 0x15b   :  { %v116_v18 = vmul.f32 %v257_v16, %v114_v17 }
 0x15d   :  { %246 = vmatmul.mubr.msk.f32.vlgmr.msra.gmra.mxu1 %vm128_vm2, %v116_v18 }
 0x21d   :  { %v198_v20 = vpop.f32.mrf.mxu1 }
 0x21e   :  { %v199_v21 = vadd.f32 %v220_v19, %v198_v20 }
 0x21f   :  { %v247_v22 = vpop.f32.mrf.mxu1 }
 0x220   :  { %202 = vst.msk [vmem:[#allocation2] sm:$0xff] %vm31_vm1, %v199_v21 }
 0x221   :  { %269 = shalt.err (!%p266_p4)
}
 0x222   :  { %212 = dma.vmem_to_hbm [thread:$0]  %s210_s10, 128, %s351_s5, [#allocation3]  }
 0x223   :  { %278 = dma.done.wait [#allocation3], 128  }
 0x224   :  { %279 = vsyncadd [#allocation3], 4294967168 }
 0x225   :  { %216 = vsyncpa [#allocation3], 1 }

</bundles_post_ra>
